<compile_context>
chip_gen: v6e
topology: v6e:2x2x1
jax: 0.10.0
libtpu: 0.0.40
codegen_flags: <defaults>
</compile_context>

<pallas_src>
import functools

import jax
import jax.numpy as jnp
from jax.experimental import pallas as pl
from jax.experimental.pallas import tpu as pltpu

EPS = 1e-6


def _round_up(n, m):
    return (n + m - 1) // m * m


def _sublayer_skip_kernel(x_ref, a2_ref, b2_ref, w_ref, b_ref, o_ref):
    x = x_ref[...].astype(jnp.float32)                    # (tile_rows, H)
    H = x.shape[-1]

    # --- LayerNorm (Annotated-Transformer style, unbiased std) ---
    mean = jnp.mean(x, axis=-1, keepdims=True)
    centered = x - mean
    var_unbiased = jnp.sum(centered * centered, axis=-1, keepdims=True) * (1.0 / (H - 1))
    std = jnp.sqrt(var_unbiased)                          # (tile_rows, 1)
    inv = pl.reciprocal(std + EPS, approx=True)           # per-row recip on the EUP
    normed = a2_ref[...] * (centered * inv) + b2_ref[...]

    # --- sublayer: dense projection on the MXU (bf16 in, f32 accumulate) ---
    y = jnp.dot(normed.astype(jnp.bfloat16), w_ref[...],
                preferred_element_type=jnp.float32)
    y = y + b_ref[...]

    # --- dropout (eval mode = identity) + residual ---
    o_ref[...] = (x + y).astype(o_ref.dtype)


@functools.partial(jax.jit, static_argnames=("tile_rows",))
def sublayer_skip_connection(x, a2, b2, w, b, *, tile_rows=256):
    B, S, H = x.shape
    rows = B * S

    # Big row tiles for real shapes; shrink (to a multiple of the 8-sublane unit)
    # for tiny inputs so the demo shapes still run without wasted work.
    tr = min(tile_rows, _round_up(rows, 8))
    padded_rows = _round_up(rows, tr)
    grid_rows = padded_rows // tr

    x2d = x.reshape(rows, H)
    if padded_rows != rows:
        x2d = jnp.pad(x2d, ((0, padded_rows - rows), (0, 0)))

    a2_2d = a2.reshape(1, H).astype(jnp.float32)
    b2_2d = b2.reshape(1, H).astype(jnp.float32)
    b_2d = b.reshape(1, H).astype(jnp.float32)
    w_bf16 = w.astype(jnp.bfloat16)                       # bf16 weight resident in VMEM

    itemsize = jnp.dtype(x.dtype).itemsize

    # Rough per-grid-step VMEM budget: double-buffered x/out tiles, bf16 weight
    # (pipelining allocates 2 buffers), param vectors, plus f32 working headroom.
    vmem_needed = (
        2 * tr * H * itemsize          # x tiles
        + 2 * tr * H * itemsize        # out tiles
        + 2 * H * H * 2                # bf16 weight buffers
        + 8 * H * 4                    # gain / bias vectors
        + 3 * tr * H * 4               # f32 working set headroom
    )
    vmem_limit = None
    if vmem_needed > (32 << 20):
        vmem_limit = min(int(vmem_needed * 5 // 4), 100 << 20)

    cost = pl.CostEstimate(
        flops=2 * padded_rows * H * H + 10 * padded_rows * H,
        transcendentals=2 * padded_rows,                  # sqrt + reciprocal per row
        bytes_accessed=2 * padded_rows * H * itemsize + H * H * 2 + 3 * H * 4,
    )

    out = pl.pallas_call(
        _sublayer_skip_kernel,
        out_shape=jax.ShapeDtypeStruct((padded_rows, H), x.dtype),
        grid_spec=pltpu.PrefetchScalarGridSpec(
            num_scalar_prefetch=0,
            grid=(grid_rows,),
            in_specs=[
                pl.BlockSpec((tr, H), lambda i: (i, 0)),   # x rows tile
                pl.BlockSpec((1, H), lambda i: (0, 0)),    # layernorm gain a2
                pl.BlockSpec((1, H), lambda i: (0, 0)),    # layernorm bias b2
                pl.BlockSpec((H, H), lambda i: (0, 0)),    # sublayer weight (bf16)
                pl.BlockSpec((1, H), lambda i: (0, 0)),    # sublayer bias
            ],
            out_specs=pl.BlockSpec((tr, H), lambda i: (i, 0)),
        ),
        compiler_params=pltpu.CompilerParams(
            dimension_semantics=("parallel",),
            vmem_limit_bytes=vmem_limit,
        ),
        cost_estimate=cost,
    )(x2d, a2_2d, b2_2d, w_bf16, b_2d)

    return out[:rows].reshape(B, S, H)


def _reference(x, a2, b2, w, b):
    # Mirrors the kernel numerics (bf16 matmul operands, f32 accumulate); the only
    # remaining drift is the approximate per-row reciprocal.
    xf = x.astype(jnp.float32)
    H = xf.shape[-1]
    mean = jnp.mean(xf, axis=-1, keepdims=True)
    c = xf - mean
    std = jnp.sqrt(jnp.sum(c * c, axis=-1, keepdims=True) / (H - 1))
    normed = a2 * c / (std + EPS) + b2
    y = jnp.dot(normed.astype(jnp.bfloat16), w.astype(jnp.bfloat16),
                preferred_element_type=jnp.float32) + b
    return (xf + y).astype(x.dtype)


if __name__ == "__main__":
    B, S, H = 2, 8, 128  # batch, seq, hidden ("size" of the module); H lane-dense

    key = jax.random.PRNGKey(0)
    kx, kw, ka, kb = jax.random.split(key, 4)

    x = jax.random.normal(kx, (B, S, H), dtype=jnp.float32)

    # Deterministic parameter init (module shapes: LayerNorm(size) + dense sublayer)
    a2 = 1.0 + 0.1 * jax.random.normal(ka, (H,), dtype=jnp.float32)   # LayerNorm gain
    b2 = 0.1 * jax.random.normal(kb, (H,), dtype=jnp.float32)          # LayerNorm bias
    w = jax.random.normal(kw, (H, H), dtype=jnp.float32) * (H ** -0.5)
    b = jnp.zeros((H,), jnp.float32)

    out = sublayer_skip_connection(x, a2, b2, w, b)
    jax.block_until_ready(out)

    ref = _reference(x, a2, b2, w, b)
    assert out.shape == (B, S, H)
    assert jnp.allclose(out, ref, atol=2e-2, rtol=2e-2), float(jnp.max(jnp.abs(out - ref)))

    print("KERNEL_OK")
</pallas_src>

<mosaic_0001>
module attributes {stable_mosaic.version = 11 : i64} {
  func.func @_sublayer_skip_kernel(%arg0: i32, %arg1: memref<16x128xf32, #tpu.memory_space<vmem>>, %arg2: memref<1x128xf32, #tpu.memory_space<vmem>>, %arg3: memref<1x128xf32, #tpu.memory_space<vmem>>, %arg4: memref<128x128xbf16, #tpu.memory_space<vmem>>, %arg5: memref<1x128xf32, #tpu.memory_space<vmem>>, %arg6: memref<16x128xf32, #tpu.memory_space<vmem>>) attributes {dimension_semantics = [#tpu.dimension_semantics<parallel>], iteration_bounds = array<i64: 1>, scalar_prefetch = 0 : i64, scratch_operands = 0 : i64, tpu.core_type = #tpu.core_type<tc>, window_params = [{transform_indices = @transform_0, window_bounds = array<i64: 16, 128>}, {pipeline_mode = #tpu.pipeline_mode<synchronous>, transform_indices = @transform_1, window_bounds = array<i64: 1, 128>}, {pipeline_mode = #tpu.pipeline_mode<synchronous>, transform_indices = @transform_2, window_bounds = array<i64: 1, 128>}, {pipeline_mode = #tpu.pipeline_mode<synchronous>, transform_indices = @transform_3, window_bounds = array<i64: 128, 128>}, {pipeline_mode = #tpu.pipeline_mode<synchronous>, transform_indices = @transform_4, window_bounds = array<i64: 1, 128>}, {transform_indices = @transform_5, window_bounds = array<i64: 16, 128>}]} {
    %c0 = arith.constant 0 : index
    %c0_0 = arith.constant 0 : index
    %0 = vector.load %arg1[%c0, %c0_0] : memref<16x128xf32, #tpu.memory_space<vmem>>, vector<16x128xf32>
    %cst = arith.constant dense<0.000000e+00> : vector<16xf32>
    %1 = vector.multi_reduction <add>, %0, %cst [1] : vector<16x128xf32> to vector<16xf32>
    %2 = vector.shape_cast %1 : vector<16xf32> to vector<16x1xf32>
    %cst_1 = arith.constant 1.280000e+02 : f32
    %3 = vector.broadcast %cst_1 : f32 to vector<16x1xf32>
    %4 = arith.divf %2, %3 : vector<16x1xf32>
    %5 = vector.broadcast %4 : vector<16x1xf32> to vector<16x128xf32>
    %6 = arith.subf %0, %5 : vector<16x128xf32>
    %7 = arith.mulf %6, %6 : vector<16x128xf32>
    %cst_2 = arith.constant dense<0.000000e+00> : vector<16xf32>
    %8 = vector.multi_reduction <add>, %7, %cst_2 [1] : vector<16x128xf32> to vector<16xf32>
    %9 = vector.shape_cast %8 : vector<16xf32> to vector<16x1xf32>
    %cst_3 = arith.constant 0.00787401571 : f32
    %10 = vector.broadcast %cst_3 : f32 to vector<16x1xf32>
    %11 = arith.mulf %9, %10 : vector<16x1xf32>
    %12 = math.sqrt %11 : vector<16x1xf32>
    %cst_4 = arith.constant 9.99999997E-7 : f32
    %13 = vector.broadcast %cst_4 : f32 to vector<16x1xf32>
    %14 = arith.addf %12, %13 : vector<16x1xf32>
    %15 = tpu.reciprocal %14 {approx = true} : vector<16x1xf32> -> vector<16x1xf32>
    %c0_5 = arith.constant 0 : index
    %c0_6 = arith.constant 0 : index
    %16 = vector.load %arg2[%c0_5, %c0_6] : memref<1x128xf32, #tpu.memory_space<vmem>>, vector<1x128xf32>
    %17 = vector.broadcast %15 : vector<16x1xf32> to vector<16x128xf32>
    %18 = arith.mulf %6, %17 : vector<16x128xf32>
    %19 = vector.broadcast %16 : vector<1x128xf32> to vector<16x128xf32>
    %20 = arith.mulf %19, %18 : vector<16x128xf32>
    %c0_7 = arith.constant 0 : index
    %c0_8 = arith.constant 0 : index
    %21 = vector.load %arg3[%c0_7, %c0_8] : memref<1x128xf32, #tpu.memory_space<vmem>>, vector<1x128xf32>
    %22 = vector.broadcast %21 : vector<1x128xf32> to vector<16x128xf32>
    %23 = arith.addf %20, %22 : vector<16x128xf32>
    %24 = arith.truncf %23 : vector<16x128xf32> to vector<16x128xbf16>
    %c0_9 = arith.constant 0 : index
    %c0_10 = arith.constant 0 : index
    %25 = vector.load %arg4[%c0_9, %c0_10] : memref<128x128xbf16, #tpu.memory_space<vmem>>, vector<128x128xbf16>
    %cst_11 = arith.constant dense<0.000000e+00> : vector<16x128xf32>
    %26 = tpu.matmul %24, %25, %cst_11 {dimension_numbers = #tpu.dot_dimension_numbers<[1], [0], [0], [1], [0, 0, 1, 1], [], []>} : vector<16x128xbf16>, vector<128x128xbf16>, vector<16x128xf32> -> vector<16x128xf32>
    %c0_12 = arith.constant 0 : index
    %c0_13 = arith.constant 0 : index
    %27 = vector.load %arg5[%c0_12, %c0_13] : memref<1x128xf32, #tpu.memory_space<vmem>>, vector<1x128xf32>
    %28 = vector.broadcast %27 : vector<1x128xf32> to vector<16x128xf32>
    %29 = arith.addf %26, %28 : vector<16x128xf32>
    %30 = arith.addf %0, %29 : vector<16x128xf32>
    %c0_14 = arith.constant 0 : index
    %c0_15 = arith.constant 0 : index
    %31 = vector.load %arg6[%c0_14, %c0_15] : memref<16x128xf32, #tpu.memory_space<vmem>>, vector<16x128xf32>
    tpu.vector_store %arg6[%c0_14, %c0_15], %30 {strides = array<i32>} : memref<16x128xf32, #tpu.memory_space<vmem>>, vector<16x128xf32>,
    return
  }
  func.func @transform_0(%arg0: i32) -> (i32, i32) {
    %c0_i32 = arith.constant 0 : i32
    %c0_i32_0 = arith.constant 0 : i32
    return %arg0, %c0_i32 : i32, i32
  }
  func.func @transform_1(%arg0: i32) -> (i32, i32) {
    %c0_i32 = arith.constant 0 : i32
    %c0_i32_0 = arith.constant 0 : i32
    %c0_i32_1 = arith.constant 0 : i32
    return %c0_i32, %c0_i32_0 : i32, i32
  }
  func.func @transform_2(%arg0: i32) -> (i32, i32) {
    %c0_i32 = arith.constant 0 : i32
    %c0_i32_0 = arith.constant 0 : i32
    %c0_i32_1 = arith.constant 0 : i32
    return %c0_i32, %c0_i32_0 : i32, i32
  }
  func.func @transform_3(%arg0: i32) -> (i32, i32) {
    %c0_i32 = arith.constant 0 : i32
    %c0_i32_0 = arith.constant 0 : i32
    %c0_i32_1 = arith.constant 0 : i32
    return %c0_i32, %c0_i32_0 : i32, i32
  }
  func.func @transform_4(%arg0: i32) -> (i32, i32) {
    %c0_i32 = arith.constant 0 : i32
    %c0_i32_0 = arith.constant 0 : i32
    %c0_i32_1 = arith.constant 0 : i32
    return %c0_i32, %c0_i32_0 : i32, i32
  }
  func.func @transform_5(%arg0: i32) -> (i32, i32) {
    %c0_i32 = arith.constant 0 : i32
    %c0_i32_0 = arith.constant 0 : i32
    return %arg0, %c0_i32 : i32, i32
  }
}

</mosaic_0001>

<bundles_post_ra>
// kernel: sublayer_skip_connection.1
= control target key start
LH: loop header
LB: loop body
LE: loop exit
PB: predicated region body
PF: predicated region fallthrough
CT: control target
= control target key end

     0   :  { %s382_s0 = inlined_call_operand.vmem [shape: f32[16,128], index: 0, kind: input, shape index: {}]   ;;  %s383_s1 = inlined_call_operand.vmem [shape: f32[1,128], index: 1, kind: input, shape index: {}]   ;;  %s384_s2 = inlined_call_operand.vmem [shape: f32[1,128], index: 2, kind: input, shape index: {}]   ;;  %s385_s3 = inlined_call_operand.vmem [shape: bf16[128,128], index: 3, kind: input, shape index: {}]   ;;  %s386_s4 = inlined_call_operand.vmem [shape: f32[1,128], index: 4, kind: input, shape index: {}]   ;;  %s387_s5 = inlined_call_operand.hbm [shape: f32[16,128], index: 5, kind: output, shape index: {}]  }
   0x1   :  { %v333_v0 = vld [vmem:[%s382_s0] sm:$0xff]  ;;  %v338_v1 = vld [vmem:[%s382_s0 + $0x8] sm:$0xff] }
   0x2   :  { %24 = vadd.xlane.f32.xlu0 %v333_v0 }
   0x6   :  { %26 = vadd.xlane.f32.xlu0 %v338_v1 }
   0x7   :  { %10 = vsyncpa [#allocation3], 0  ;;  %v257_v10 = vld [vmem:[%s385_s3 + $0x38] sm:$0xff]   ;;  %v295_v11 = vmov 0.0   ;;  %v258_v12 = vld [vmem:[%s385_s3 + $0x30] sm:$0xff]   ;;  %vm296_vm0 = vmmov 0  }
   0x8   :  { %232 = vmatprep.subr.bf16.mxu0 %v295_v11  ;;  %v259_v13 = vld [vmem:[%s385_s3 + $0x28] sm:$0xff]   ;;  %v260_v14 = vld [vmem:[%s385_s3 + $0x20] sm:$0xff]   ;;  %248 = vmatprep.mubr.msk.bf16.mxu0 %vm296_vm0, %v295_v11  ;;  %v261_v15 = vld [vmem:[%s385_s3 + $0x18] sm:$0xff]  }
   0x9   :  { %233 = vmatpush3.bf16.msra.mxu0 %v257_v10  ;;  %v262_v16 = vld [vmem:[%s385_s3 + $0x10] sm:$0xff]   ;;  %v263_v17 = vld [vmem:[%s385_s3 + $0x8] sm:$0xff]   ;;  %v264_v18 = vld [vmem:[%s385_s3] sm:$0xff]  }
   0xa   :  { %234 = vmatprep.subr.bf16.mxu0 %v295_v11  ;;  %v212_v37 = vld [vmem:[%s383_s1] ss:$0 sm:$0xff]  ;;  %s297_s1 = smov [#allocation2]  }
   0xb   :  { %v213_v41 = vld [vmem:[%s384_s2] ss:$0 sm:$0xff]  ;;  %s201_s17 = sshll.u32 %s297_s1, 4  ;;  %s202_s17 = int_to_ptr.vmem [resolvable:$true] %s201_s17 }
   0xc   :  { %v214_v46 = vld [vmem:[%s386_s4] ss:$0 sm:$0xff]  ;;  %s273_s2 = scalar_lea.vmem %s202_s17, 256  ;;  %p278_p1 = scmp.lt.s32.totalorder %s202_s17, %s202_s17 }
   0xd   :  { %235 = vmatpush3.bf16.msra.mxu0 %v258_v12  ;;  %p274_p0 = scmp.ne.s32.totalorder %s202_s17, %s273_s2  ;;  %p279_p2 = scmp.lt.s32.totalorder %s273_s2, %s273_s2 }
   0xe   :  { %236 = vmatprep.subr.bf16.mxu0 %v295_v11 }
   0xf   :  { %p280_p3 = por %p279_p2, %p278_p1 }
  0x11   :  { %237 = vmatpush3.bf16.msra.mxu0 %v259_v13  ;;  %p281_p4 = pnand %p280_p3, %p274_p0 }
  0x12   :  { %238 = vmatprep.subr.bf16.mxu0 %v295_v11 }
  0x15   :  { %239 = vmatpush3.bf16.msra.mxu0 %v260_v14 }
  0x16   :  { %240 = vmatprep.subr.bf16.mxu0 %v295_v11 }
  0x19   :  { %241 = vmatpush3.bf16.msra.mxu0 %v261_v15 }
  0x1a   :  { %242 = vmatprep.subr.bf16.mxu0 %v295_v11 }
  0x1d   :  { %243 = vmatpush3.bf16.msra.mxu0 %v262_v16 }
  0x1e   :  { %244 = vmatprep.subr.bf16.mxu0 %v295_v11 }
  0x21   :  { %245 = vmatpush3.bf16.msra.mxu0 %v263_v17 }
  0x22   :  { %246 = vmatprep.subr.bf16.mxu0 %v295_v11 }
  0x25   :  { %247 = vmatpush3.bf16.msra.mxu0 %v264_v18 }
  0x8b   :  { %v25_v2 = vpop.xlane.xlu0 %24 }
  0x8c   :  { %v29_v3 = vmul.f32 0.0078125, %v25_v2 }
  0x8e   :  { %v31_v4 = vsub.f32 %v333_v0, %v29_v3 }
  0x8f   :  { %v27_v5 = vpop.xlane.xlu0 %26 }
  0x90   :  { %v30_v6 = vmul.f32 0.0078125, %v27_v5  ;;  %v33_v7 = vmul.f32 %v31_v4, %v31_v4 }
  0x92   :  { %v32_v8 = vsub.f32 %v338_v1, %v30_v6  ;;  %35 = vadd.xlane.f32.xlu1 %v33_v7 }
  0x94   :  { %v34_v9 = vmul.f32 %v32_v8, %v32_v8 }
  0x96   :  { %37 = vadd.xlane.f32.xlu1 %v34_v9 }
 0x11b   :  { %v36_v19 = vpop.xlane.xlu1 %35 }
 0x11c   :  { %v39_v20 = vmul.f32 0.007874016, %v36_v19 }
 0x11e   :  { %265 = vrsqrt.f32 %v39_v20  ;;  %vm43_vm1 = vcmp.eq.f32.partialorder %v39_v20, inf  ;;  %v46_v25 = vand.u32 2147483648, %v39_v20  ;;  %vm45_vm2 = vcmp.eq.f32.partialorder %v39_v20, 0.0 }
 0x11f   :  { %v38_v21 = vpop.xlane.xlu1 %37 }
 0x120   :  { %v40_v22 = vmul.f32 0.007874016, %v38_v21 }
 0x122   :  { %267 = vrsqrt.f32 %v40_v22  ;;  %vm50_vm3 = vcmp.eq.f32.partialorder %v40_v22, inf  ;;  %v53_v31 = vand.u32 2147483648, %v40_v22  ;;  %vm52_vm4 = vcmp.eq.f32.partialorder %v40_v22, 0.0 }
 0x12b   :  { %v266_v23 = vpop.eup %265 }
 0x12c   :  { %v42_v24 = vmul.f32 %v266_v23, %v39_v20 }
 0x12e   :  { %v44_v26 = vsel %vm43_vm1, %v39_v20, %v42_v24 }
 0x12f   :  { %v268_v27 = vpop.eup %267  ;;  %v47_v28 = vsel %vm45_vm2, %v46_v25, %v44_v26 }
 0x130   :  { %v55_v29 = vadd.f32 1e-06, %v47_v28  ;;  %v49_v30 = vmul.f32 %v268_v27, %v40_v22 }
 0x132   :  { %269 = vrcp.f32 %v55_v29  ;;  %v51_v32 = vsel %vm50_vm3, %v40_v22, %v49_v30 }
 0x133   :  { %v54_v33 = vsel %vm52_vm4, %v53_v31, %v51_v32 }
 0x134   :  { %v56_v34 = vadd.f32 1e-06, %v54_v33 }
 0x136   :  { %271 = vrcp.f32 %v56_v34 }
 0x13f   :  { %v270_v35 = vpop.eup %269 }
 0x140   :  { %v60_v36 = vmul.f32 %v270_v35, %v31_v4 }
 0x142   :  { %v68_v40 = vmul.f32 %v212_v37, %v60_v36 }
 0x143   :  { %v272_v38 = vpop.eup %271 }
 0x144   :  { %v61_v39 = vmul.f32 %v272_v38, %v32_v8  ;;  %v77_v43 = vadd.f32 %v213_v41, %v68_v40 }
 0x146   :  { %v69_v42 = vmul.f32 %v212_v37, %v61_v39 }
 0x148   :  { %v78_v44 = vadd.f32 %v213_v41, %v69_v42 }
 0x14a   :  { %v79_v45 = vpack.c.bf16 %v78_v44, %v77_v43 }
 0x14c   :  { %249 = vmatmul.mubr.bf16.vlgmr.msra.gmra.mxu0 %v79_v45 }
 0x20c   :  { %v185_v47 = vpop.f32.mrf.mxu0 }
 0x20d   :  { %v186_v48 = vadd.f32 %v214_v46, %v185_v47 }
 0x20e   :  { %v250_v49 = vpop.f32.mrf.mxu0 }
 0x20f   :  { %v192_v50 = vadd.f32 %v186_v48, %v333_v0 }
 0x210   :  { %v188_v51 = vpop.f32.mrf.mxu0 }
 0x211   :  { %194 = vst [vmem:[#allocation2] sm:$0xff] %v192_v50  ;;  %v189_v52 = vadd.f32 %v214_v46, %v188_v51 }
 0x212   :  { %v251_v53 = vpop.f32.mrf.mxu0 }
 0x213   :  { %v193_v54 = vadd.f32 %v189_v52, %v338_v1 }
 0x215   :  { %195 = vst [vmem:[#allocation2 + $0x8] sm:$0xff] %v193_v54 }
 0x216   :  { %284 = shalt.err (!%p281_p4)
}
 0x217   :  { %s298_s4 = smov 128   ;;  %s299_s18 = smov 8  }
 0x218   :  { %207 = dma.vmem_to_hbm [thread:$0]  %s202_s17, 256, %s387_s5, [#allocation3], %s298_s4, %s298_s4, %s299_s18  }
 0x219   :  { %293 = dma.done.wait [#allocation3], 256  }
 0x21a   :  { %294 = vsyncadd [#allocation3], 4294967040 }
 0x21b   :  { %211 = vsyncpa [#allocation3], 1 }

</bundles_post_ra>
